<compile_context>
chip_gen: v7x
topology: tpu7x:2x2x1
jax: 0.10.0
libtpu: 0.0.40
codegen_flags: <defaults>
</compile_context>

<pallas_src>
import functools
import math

import jax
import jax.numpy as jnp
import numpy as np
from jax.experimental import pallas as pl
from jax.experimental.pallas import tpu as pltpu

D_MODEL = 32
N_HEADS = 4
MIN_FACTOR = 3
MAX_FACTOR = 10
N_STATS = 4  # [sum q, sum q^2, sum e, sum e*q]

_VMEM_LIMIT = 32 * 1024 * 1024  # >> actual footprint; legal on v5e/v6e/v7x


def _segment_matrix(d_model, n_heads):
    """Block-diagonal (N_STATS*D, N_STATS*H) segment-sum matrix for per-head sums."""
    dk = d_model // n_heads
    seg = np.zeros((N_STATS * d_model, N_STATS * n_heads), np.float32)
    for s in range(N_STATS):
        for h in range(n_heads):
            r0 = s * d_model + h * dk
            seg[r0:r0 + dk, s * n_heads + h] = 1.0
    return jnp.asarray(seg)


# ------------------- Kernel A: fused QKV projection + scores -----------------
def _qkv_score_kernel(x_ref, w_ref, b_ref, seg_ref, qkv_ref, sc_ref,
                      *, d_model, n_heads):
    dk = d_model // n_heads
    nh = n_heads

    x = x_ref[...]                                                    # (TM, D) f32
    # f32 projection: scores feed a discrete top-u selection, keep full precision
    qkv = jnp.dot(x, w_ref[...], preferred_element_type=jnp.float32) + b_ref[...]
    qkv_ref[...] = qkv.astype(qkv_ref.dtype)                          # bf16 store

    q = qkv[:, :d_model]                                              # (TM, D)
    # one global per-row max (exact for the lse identity) -> single XLU reduce
    m = jnp.max(q, axis=-1, keepdims=True)                            # (TM, 1)
    e = jnp.exp(q - m)                                                # (TM, D)

    # all per-head sums in ONE block-diagonal segment-sum matmul on the MXU:
    # (TM, 4D=128) @ (128, 4H) -> [sum q | sum q^2 | sum e | sum e*q]
    feat = jnp.concatenate([q, q * q, e, e * q], axis=1)              # (TM, 4D)
    st = jnp.dot(feat, seg_ref[...], preferred_element_type=jnp.float32)

    sq, sq2 = st[:, 0:nh], st[:, nh:2 * nh]
    se, seq = st[:, 2 * nh:3 * nh], st[:, 3 * nh:4 * nh]

    lse = jnp.log(se) + m
    ent = lse - seq / se                      # entropy = lse - sum(p*q)
    l2 = jnp.sqrt(sq2)
    var = (sq2 - sq * sq * (1.0 / dk)) * (1.0 / (dk - 1))             # unbiased
    sc_ref[...] = (0.5 * l2 + 0.3 * ent + 0.2 * var).astype(sc_ref.dtype)


def qkv_scores_pallas(x2d, wqkv_t, bqkv, seg):
    M, D = x2d.shape
    D3 = wqkv_t.shape[1]
    tm = M if M <= 1024 else 1024        # large row tiles amortize per-step overhead
    kern = functools.partial(_qkv_score_kernel, d_model=D, n_heads=N_HEADS)
    return pl.pallas_call(
        kern,
        out_shape=(
            jax.ShapeDtypeStruct((M, D3), jnp.bfloat16),   # bf16 inter-kernel buffer
            jax.ShapeDtypeStruct((M, N_HEADS), jnp.float32),
        ),
        grid=(pl.cdiv(M, tm),),
        in_specs=[
            pl.BlockSpec((tm, D), lambda i: (i, 0)),
            pl.BlockSpec((D, D3), lambda i: (0, 0)),
            pl.BlockSpec((1, D3), lambda i: (0, 0)),
            pl.BlockSpec((N_STATS * D, N_STATS * N_HEADS), lambda i: (0, 0)),
        ],
        out_specs=[
            pl.BlockSpec((tm, D3), lambda i: (i, 0)),
            pl.BlockSpec((tm, N_HEADS), lambda i: (i, 0)),
        ],
        compiler_params=pltpu.CompilerParams(
            dimension_semantics=("parallel",),
            vmem_limit_bytes=_VMEM_LIMIT,
        ),
    )(x2d, wqkv_t, bqkv, seg)


# -------- Kernel B: dense+mask sparse attention + fused output projection ----
def _sparse_attn_kernel(qkv_ref, sc_ref, wo_ref, bo_ref, o_ref, *, n_heads):
    L, D3 = qkv_ref.shape
    d_model = D3 // 3
    dk = d_model // n_heads
    scale = 1.0 / math.sqrt(dk)

    qkv = qkv_ref[...]                                                # (L, 3D) bf16
    s = sc_ref[...]                                                   # (L, H)  f32

    # ---- per-batch dynamic sparse count u (head 0), computed in-kernel -------
    mean = jnp.mean(s, axis=0, keepdims=True)                         # (1, H)
    var = jnp.sum((s - mean) ** 2, axis=0, keepdims=True) * (1.0 / (L - 1))
    std = jnp.sqrt(var)
    fac = jnp.clip(jnp.round(std / (mean + 1e-6) * MAX_FACTOR),
                   MIN_FACTOR, MAX_FACTOR).astype(jnp.int32)          # (1, H)
    u0 = fac[:, 0:1]                                                  # (1, 1) head-0 u

    # ---- top-u membership mask via stable rank (vectorized, no gather) -------
    # TODO(synk): per-batch dynamic u has no dynamic-shape Pallas equivalent; it
    # is realized as a rank-threshold mask over the fixed (L,) query window.
    si = s[:, None, :]                                                # (L, 1, H)
    sj = s[None, :, :]                                                # (1, L, H)
    ii = jax.lax.broadcasted_iota(jnp.int32, (L, L, 1), 0)
    jj = jax.lax.broadcasted_iota(jnp.int32, (L, L, 1), 1)
    beats = (sj > si) | ((sj == si) & (jj < ii))                      # (L, L, H)
    rank = jnp.sum(beats.astype(jnp.int32), axis=1)                   # (L, H)
    mask = (rank < u0).astype(jnp.float32)                            # (L, H)

    # ---- dense per-head attention, non-selected query rows zeroed ------------
    head_outs = []
    for h in range(n_heads):
        qh = qkv[:, h * dk:(h + 1) * dk]                              # (L, dk) bf16
        kh = qkv[:, d_model + h * dk:d_model + (h + 1) * dk]
        vh = qkv[:, 2 * d_model + h * dk:2 * d_model + (h + 1) * dk]
        sc = jax.lax.dot_general(
            qh, kh, (((1,), (1,)), ((), ())),
            preferred_element_type=jnp.float32) * scale               # (L, L) f32
        aw = jax.nn.softmax(sc, axis=-1)                              # f32
        ov = jnp.dot(aw.astype(jnp.bfloat16), vh,
                     preferred_element_type=jnp.float32)              # (L, dk) f32
        head_outs.append(ov * mask[:, h:h + 1])                       # zero rows i>=u

    attn_full = jnp.concatenate(head_outs, axis=1)                    # (L, D) f32
    y = jnp.dot(attn_full.astype(jnp.bfloat16), wo_ref[...],
                preferred_element_type=jnp.float32) + bo_ref[...]     # fused w_o
    o_ref[...] = y.astype(o_ref.dtype)


def sparse_attn_out_pallas(qkv_flat, scores_flat, wo_t, bo, batch, seq_len):
    M, D3 = qkv_flat.shape
    D = D3 // 3
    kern = functools.partial(_sparse_attn_kernel, n_heads=N_HEADS)
    # TODO(synk): on v7x (2 TCs) with batch<=2 a second parallel grid axis would
    # keep both cores busy; at L=16 the extra split is not worth it.
    return pl.pallas_call(
        kern,
        out_shape=jax.ShapeDtypeStruct((batch, seq_len, D), jnp.float32),
        grid=(batch,),
        in_specs=[
            pl.BlockSpec((seq_len, D3), lambda b: (b, 0)),
            pl.BlockSpec((seq_len, N_HEADS), lambda b: (b, 0)),
            pl.BlockSpec((D, D), lambda b: (0, 0)),
            pl.BlockSpec((1, D), lambda b: (0, 0)),
        ],
        out_specs=pl.BlockSpec((None, seq_len, D), lambda b: (b, 0, 0)),
        compiler_params=pltpu.CompilerParams(
            dimension_semantics=("parallel",),
            vmem_limit_bytes=_VMEM_LIMIT,
        ),
    )(qkv_flat, scores_flat, wo_t, bo)


# ------------------------------ module forward --------------------------------
def prepare_params(params):
    """One-time prep: fold transposes / QKV concat / bf16 casts out of the hot path."""
    wqkv_t = jnp.concatenate(
        [params["wq"].T, params["wk"].T, params["wv"].T], axis=1)     # (D, 3D) f32
    bqkv = jnp.concatenate(
        [params["bq"], params["bk"], params["bv"]]).reshape(1, -1)    # (1, 3D)
    return dict(
        wqkv_t=wqkv_t, bqkv=bqkv,
        wo_t=params["wo"].T.astype(jnp.bfloat16),                     # bf16 MXU operand
        bo=params["bo"].reshape(1, -1),
        seg=_segment_matrix(D_MODEL, N_HEADS),
    )


def forward_pallas(x, prepped):
    B, L, D = x.shape
    x2 = x.reshape(B * L, D)
    qkv_flat, sc_flat = qkv_scores_pallas(
        x2, prepped["wqkv_t"], prepped["bqkv"], prepped["seg"])
    y = sparse_attn_out_pallas(
        qkv_flat, sc_flat, prepped["wo_t"], prepped["bo"], B, L)
    return y, None


# -------------------------- pure-JAX reference check --------------------------
def forward_ref(x, params):
    B, L, D = x.shape
    dk = D // N_HEADS

    def lin(z, w, b):
        return z @ w.T + b

    def split(z):
        return z.reshape(B, L, N_HEADS, dk).transpose(0, 2, 1, 3)

    Q = split(lin(x, params["wq"], params["bq"]))
    K = split(lin(x, params["wk"], params["bk"]))
    V = split(lin(x, params["wv"], params["bv"]))

    l2 = jnp.sqrt(jnp.sum(Q * Q, -1))
    prob = jax.nn.softmax(Q, -1)
    ent = -jnp.sum(prob * jnp.log(prob + 1e-9), -1)
    var = jnp.var(Q, -1, ddof=1)
    qs = 0.5 * l2 + 0.3 * ent + 0.2 * var                            # (B, H, L)

    std = jnp.std(qs, axis=2, ddof=1)
    mean = jnp.mean(qs, axis=2)
    fac = jnp.clip(
        jnp.round(std / (mean + 1e-6) * MAX_FACTOR).astype(jnp.int32),
        MIN_FACTOR, MAX_FACTOR,
    )                                                                # (B, H)

    outs = []
    for b in range(B):
        u = min(int(fac[b, 0]), L)
        top_idx = jnp.argsort(-qs[b], axis=-1)[:, :u]                # (H, u)
        Qs = jnp.take_along_axis(Q[b], top_idx[:, :, None], axis=1)
        sc = jnp.einsum("hud,hkd->huk", Qs, K[b]) / math.sqrt(dk)
        aw = jax.nn.softmax(sc, -1)
        o = jnp.einsum("huk,hkd->hud", aw, V[b])
        full = jnp.zeros((N_HEADS, L, dk), jnp.float32)
        for h in range(N_HEADS):
            full = full.at[h, top_idx[h]].set(o[h])
        outs.append(full.transpose(1, 0, 2).reshape(L, D))
    out = jnp.stack(outs, 0)
    return lin(out, params["wo"], params["bo"]), None


# ----------------------------------- params ------------------------------------
def init_params(key, d_model):
    ks = jax.random.split(key, 8)
    bound = 1.0 / math.sqrt(d_model)

    def u(k, shape):
        return jax.random.uniform(k, shape, jnp.float32, -bound, bound)

    return dict(
        wq=u(ks[0], (d_model, d_model)), bq=u(ks[1], (d_model,)),
        wk=u(ks[2], (d_model, d_model)), bk=u(ks[3], (d_model,)),
        wv=u(ks[4], (d_model, d_model)), bv=u(ks[5], (d_model,)),
        wo=u(ks[6], (d_model, d_model)), bo=u(ks[7], (d_model,)),
    )


if __name__ == "__main__":
    key = jax.random.PRNGKey(0)
    pkey, xkey = jax.random.split(key)
    params = init_params(pkey, D_MODEL)
    prepped = prepare_params(params)

    B, L = 2, 16
    x = jax.random.normal(xkey, (B, L, D_MODEL), jnp.float32)

    y, _ = forward_pallas(x, prepped)
    y = jax.block_until_ready(y)

    y_ref, _ = forward_ref(x, params)
    np.testing.assert_allclose(np.asarray(y), np.asarray(y_ref), rtol=2e-2, atol=2e-2)

    print("KERNEL_OK")
</pallas_src>

<mosaic_0001>
module attributes {stable_mosaic.version = 11 : i64} {
  func.func @_qkv_score_kernel(%arg0: i32, %arg1: memref<32x32xf32, #tpu.memory_space<vmem>>, %arg2: memref<32x96xf32, #tpu.memory_space<vmem>>, %arg3: memref<1x96xf32, #tpu.memory_space<vmem>>, %arg4: memref<128x16xf32, #tpu.memory_space<vmem>>, %arg5: memref<32x96xbf16, #tpu.memory_space<vmem>>, %arg6: memref<32x4xf32, #tpu.memory_space<vmem>>) attributes {dimension_semantics = [#tpu.dimension_semantics<parallel>], iteration_bounds = array<i64: 1>, scalar_prefetch = 0 : i64, scratch_operands = 0 : i64, tpu.core_type = #tpu.core_type<tc>, window_params = [{transform_indices = @transform_0, window_bounds = array<i64: 32, 32>}, {pipeline_mode = #tpu.pipeline_mode<synchronous>, transform_indices = @transform_1, window_bounds = array<i64: 32, 96>}, {pipeline_mode = #tpu.pipeline_mode<synchronous>, transform_indices = @transform_2, window_bounds = array<i64: 1, 96>}, {pipeline_mode = #tpu.pipeline_mode<synchronous>, transform_indices = @transform_3, window_bounds = array<i64: 128, 16>}, {transform_indices = @transform_4, window_bounds = array<i64: 32, 96>}, {transform_indices = @transform_5, window_bounds = array<i64: 32, 4>}]} {
    %c0 = arith.constant 0 : index
    %c0_0 = arith.constant 0 : index
    %0 = vector.load %arg1[%c0, %c0_0] : memref<32x32xf32, #tpu.memory_space<vmem>>, vector<32x32xf32>
    %c0_1 = arith.constant 0 : index
    %c0_2 = arith.constant 0 : index
    %1 = vector.load %arg2[%c0_1, %c0_2] : memref<32x96xf32, #tpu.memory_space<vmem>>, vector<32x96xf32>
    %cst = arith.constant dense<0.000000e+00> : vector<32x96xf32>
    %2 = tpu.matmul %0, %1, %cst {dimension_numbers = #tpu.dot_dimension_numbers<[1], [0], [0], [1], [0, 0, 1, 1], [], []>} : vector<32x32xf32>, vector<32x96xf32>, vector<32x96xf32> -> vector<32x96xf32>
    %c0_3 = arith.constant 0 : index
    %c0_4 = arith.constant 0 : index
    %3 = vector.load %arg3[%c0_3, %c0_4] : memref<1x96xf32, #tpu.memory_space<vmem>>, vector<1x96xf32>
    %4 = vector.broadcast %3 : vector<1x96xf32> to vector<32x96xf32>
    %5 = arith.addf %2, %4 : vector<32x96xf32>
    %6 = arith.truncf %5 : vector<32x96xf32> to vector<32x96xbf16>
    %c0_5 = arith.constant 0 : index
    %c0_6 = arith.constant 0 : index
    %7 = vector.load %arg5[%c0_5, %c0_6] : memref<32x96xbf16, #tpu.memory_space<vmem>>, vector<32x96xbf16>
    tpu.vector_store %arg5[%c0_5, %c0_6], %6 {strides = array<i32>} : memref<32x96xbf16, #tpu.memory_space<vmem>>, vector<32x96xbf16>,
    %8 = vector.extract_strided_slice %5 {offsets = [0, 0], sizes = [32, 32], strides = [1, 1]} : vector<32x96xf32> to vector<32x32xf32>
    %cst_7 = arith.constant dense<0xFF800000> : vector<32xf32>
    %9 = vector.multi_reduction <maximumf>, %8, %cst_7 [1] : vector<32x32xf32> to vector<32xf32>
    %10 = vector.shape_cast %9 : vector<32xf32> to vector<32x1xf32>
    %11 = vector.broadcast %10 : vector<32x1xf32> to vector<32x32xf32>
    %12 = arith.subf %8, %11 : vector<32x32xf32>
    %13 = math.exp %12 : vector<32x32xf32>
    %14 = arith.mulf %8, %8 : vector<32x32xf32>
    %15 = arith.mulf %13, %8 : vector<32x32xf32>
    %16 = tpu.concatenate %8, %14, %13, %15 in 1 : vector<32x32xf32>, vector<32x32xf32>, vector<32x32xf32>, vector<32x32xf32> -> vector<32x128xf32>
    %c0_8 = arith.constant 0 : index
    %c0_9 = arith.constant 0 : index
    %17 = vector.load %arg4[%c0_8, %c0_9] : memref<128x16xf32, #tpu.memory_space<vmem>>, vector<128x16xf32>
    %cst_10 = arith.constant dense<0.000000e+00> : vector<32x16xf32>
    %18 = tpu.matmul %16, %17, %cst_10 {dimension_numbers = #tpu.dot_dimension_numbers<[1], [0], [0], [1], [0, 0, 1, 1], [], []>} : vector<32x128xf32>, vector<128x16xf32>, vector<32x16xf32> -> vector<32x16xf32>
    %19 = vector.extract_strided_slice %18 {offsets = [0, 0], sizes = [32, 4], strides = [1, 1]} : vector<32x16xf32> to vector<32x4xf32>
    %20 = vector.extract_strided_slice %18 {offsets = [0, 4], sizes = [32, 4], strides = [1, 1]} : vector<32x16xf32> to vector<32x4xf32>
    %21 = vector.extract_strided_slice %18 {offsets = [0, 8], sizes = [32, 4], strides = [1, 1]} : vector<32x16xf32> to vector<32x4xf32>
    %22 = vector.extract_strided_slice %18 {offsets = [0, 12], sizes = [32, 4], strides = [1, 1]} : vector<32x16xf32> to vector<32x4xf32>
    %23 = math.log %21 : vector<32x4xf32>
    %24 = vector.broadcast %10 : vector<32x1xf32> to vector<32x4xf32>
    %25 = arith.addf %23, %24 : vector<32x4xf32>
    %26 = arith.divf %22, %21 : vector<32x4xf32>
    %27 = arith.subf %25, %26 : vector<32x4xf32>
    %28 = math.sqrt %20 : vector<32x4xf32>
    %29 = arith.mulf %19, %19 : vector<32x4xf32>
    %cst_11 = arith.constant 1.250000e-01 : f32
    %30 = vector.broadcast %cst_11 : f32 to vector<32x4xf32>
    %31 = arith.mulf %29, %30 : vector<32x4xf32>
    %32 = arith.subf %20, %31 : vector<32x4xf32>
    %cst_12 = arith.constant 0.142857149 : f32
    %33 = vector.broadcast %cst_12 : f32 to vector<32x4xf32>
    %34 = arith.mulf %32, %33 : vector<32x4xf32>
    %cst_13 = arith.constant 5.000000e-01 : f32
    %35 = vector.broadcast %cst_13 : f32 to vector<32x4xf32>
    %36 = arith.mulf %35, %28 : vector<32x4xf32>
    %cst_14 = arith.constant 3.000000e-01 : f32
    %37 = vector.broadcast %cst_14 : f32 to vector<32x4xf32>
    %38 = arith.mulf %37, %27 : vector<32x4xf32>
    %39 = arith.addf %36, %38 : vector<32x4xf32>
    %cst_15 = arith.constant 2.000000e-01 : f32
    %40 = vector.broadcast %cst_15 : f32 to vector<32x4xf32>
    %41 = arith.mulf %40, %34 : vector<32x4xf32>
    %42 = arith.addf %39, %41 : vector<32x4xf32>
    %c0_16 = arith.constant 0 : index
    %c0_17 = arith.constant 0 : index
    %43 = vector.load %arg6[%c0_16, %c0_17] : memref<32x4xf32, #tpu.memory_space<vmem>>, vector<32x4xf32>
    tpu.vector_store %arg6[%c0_16, %c0_17], %42 {strides = array<i32>} : memref<32x4xf32, #tpu.memory_space<vmem>>, vector<32x4xf32>,
    return
  }
  func.func @transform_0(%arg0: i32) -> (i32, i32) {
    %c0_i32 = arith.constant 0 : i32
    %c0_i32_0 = arith.constant 0 : i32
    return %arg0, %c0_i32 : i32, i32
  }
  func.func @transform_1(%arg0: i32) -> (i32, i32) {
    %c0_i32 = arith.constant 0 : i32
    %c0_i32_0 = arith.constant 0 : i32
    %c0_i32_1 = arith.constant 0 : i32
    return %c0_i32, %c0_i32_0 : i32, i32
  }
  func.func @transform_2(%arg0: i32) -> (i32, i32) {
    %c0_i32 = arith.constant 0 : i32
    %c0_i32_0 = arith.constant 0 : i32
    %c0_i32_1 = arith.constant 0 : i32
    return %c0_i32, %c0_i32_0 : i32, i32
  }
  func.func @transform_3(%arg0: i32) -> (i32, i32) {
    %c0_i32 = arith.constant 0 : i32
    %c0_i32_0 = arith.constant 0 : i32
    %c0_i32_1 = arith.constant 0 : i32
    return %c0_i32, %c0_i32_0 : i32, i32
  }
  func.func @transform_4(%arg0: i32) -> (i32, i32) {
    %c0_i32 = arith.constant 0 : i32
    %c0_i32_0 = arith.constant 0 : i32
    return %arg0, %c0_i32 : i32, i32
  }
  func.func @transform_5(%arg0: i32) -> (i32, i32) {
    %c0_i32 = arith.constant 0 : i32
    %c0_i32_0 = arith.constant 0 : i32
    return %arg0, %c0_i32 : i32, i32
  }
}

</mosaic_0001>

<bundles_post_ra>
// kernel: tpu_custom_call.1
= control target key start
LH: loop header
LB: loop body
LE: loop exit
PB: predicated region body
PF: predicated region fallthrough
CT: control target
= control target key end

     0   :  { %vm35_vm0 = vcmask 261120   ;;  %s1065_s0 = inlined_call_operand.vmem [shape: f32[32,32], index: 0, kind: input, shape index: {}]   ;;  %s1066_s1 = inlined_call_operand.vmem [shape: f32[32,96], index: 1, kind: input, shape index: {}]   ;;  %s1067_s2 = inlined_call_operand.vmem [shape: f32[1,96], index: 2, kind: input, shape index: {}]   ;;  %s1068_s3 = inlined_call_operand.vmem [shape: f32[128,16], index: 3, kind: input, shape index: {}]   ;;  %s1069_s4 = inlined_call_operand.hbm [shape: bf16[32,96], index: 4, kind: output, shape index: {0}]   ;;  %s1070_s5 = inlined_call_operand.vmem [shape: f32[32,4], index: 5, kind: output, shape index: {1}]  }
   0x1   :  { %v24_v0 = vld [vmem:[%s1066_s1] sm:$0xff]  ;;  %v25_v1 = vld [vmem:[%s1066_s1 + $0x8] sm:$0xff]  ;;  %v26_v2 = vld [vmem:[%s1066_s1 + $0x10] sm:$0xff] }
   0x2   :  { %v635_v3 = vpack.c.bf16 %v25_v1, %v24_v0  ;;  %v27_v4 = vld [vmem:[%s1066_s1 + $0x18] sm:$0xff]  ;;  %v20_v5 = vld [vmem:[%s1065_s0] sm:$0xff] }
   0x3   :  { %v639_v6 = vpack.c.bf16 %v27_v4, %v26_v2  ;;  %591 = vmatprep.mubr.msk.f32.mxu0 %vm35_vm0, %v20_v5 }
   0x4   :  { %11 = vsyncpa [#allocation3], 0  ;;  %636 = vmatprep.subr.bf16.mxu0 %v635_v3  ;;  %v21_v7 = vld [vmem:[%s1065_s0 + $0x8] sm:$0xff]  ;;  %v22_v8 = vld [vmem:[%s1065_s0 + $0x10] sm:$0xff]  ;;  %vm149_vm1 = vcmask 781312   ;;  %s768_s13 = smov 64  }
   0x5   :  { %638 = vmatpush3.bf16.msra.mxu0 %v635_v3  ;;  %v23_v9 = vld [vmem:[%s1065_s0 + $0x18] sm:$0xff]  ;;  %v542_v10 = vld [vmem:[%s1067_s2] ss:$0 sm:$0xff]  ;;  %s767_s0 = smov 32   ;;  %v249_v34 = vld [vmem:[%s1068_s3 + $0x8] sm:$0xff]  ;;  %vm238_vm2 = vcmask 523264  }
   0x6   :  { %640 = vmatprep.subr.bf16.mxu0 %v639_v6  ;;  %v248_v33 = vld [vmem:[%s1068_s3] sm:$0xff]  ;;  %v250_v35 = vld [vmem:[%s1068_s3 + $0x10] sm:$0xff]  ;;  %v251_v37 = vld [vmem:[%s1068_s3 + $0x18] sm:$0xff]  ;;  %vm243_vm3 = vcmask 785408   ;;  %s770_s14 = smov 4   ;;  %s771_s15 = smov 124  }
   0x7   :  { %v643_v36 = vpack.c.bf16 %v249_v34, %v248_v33  ;;  %v647_v38 = vpack.c.bf16 %v251_v37, %v250_v35  ;;  %v252_v39 = vld [vmem:[%s1068_s3 + $0x20] sm:$0xff]  ;;  %v253_v40 = vld [vmem:[%s1068_s3 + $0x28] sm:$0xff]  ;;  %v254_v42 = vld [vmem:[%s1068_s3 + $0x30] sm:$0xff]  ;;  %s772_s16 = smov [#allocation2]  }
   0x8   :  { %v651_v41 = vpack.c.bf16 %v253_v40, %v252_v39  ;;  %v255_v43 = vld [vmem:[%s1068_s3 + $0x38] sm:$0xff]  ;;  %v256_v45 = vld [vmem:[%s1068_s3 + $0x40] sm:$0xff]  ;;  %v257_v46 = vld [vmem:[%s1068_s3 + $0x48] sm:$0xff]  ;;  %s527_s17 = sshll.u32 %s772_s16, 4  ;;  %s528_s17 = int_to_ptr.vmem [resolvable:$true] %s527_s17 }
   0x9   :  { %642 = vmatpush3.bf16.msra.mxu0 %v639_v6  ;;  %644 = vmatprep.subr.bf16.mxu1 %v643_v36  ;;  %v655_v44 = vpack.c.bf16 %v255_v43, %v254_v42  ;;  %v659_v47 = vpack.c.bf16 %v257_v46, %v256_v45  ;;  %v258_v48 = vld [vmem:[%s1068_s3 + $0x50] sm:$0xff]  ;;  %v259_v49 = vld [vmem:[%s1068_s3 + $0x58] sm:$0xff]  ;;  %v260_v59 = vld [vmem:[%s1068_s3 + $0x60] sm:$0xff]  ;;  %s743_s18 = scalar_lea.vmem %s528_s17, 256  ;;  %p748_p1 = scmp.lt.s32.totalorder %s528_s17, %s528_s17 }
   0xa   :  { %646 = vmatpush3.bf16.msra.mxu1 %v643_v36  ;;  %v663_v50 = vpack.c.bf16 %v259_v49, %v258_v48  ;;  %v261_v60 = vld [vmem:[%s1068_s3 + $0x68] sm:$0xff]  ;;  %v262_v2 = vld [vmem:[%s1068_s3 + $0x70] sm:$0xff]  ;;  %v263_v3 = vld [vmem:[%s1068_s3 + $0x78] sm:$0xff]  ;;  %s769_s3 = smov 96   ;;  %p744_p0 = scmp.ne.s32.totalorder %s528_s17, %s743_s18 }
   0xb   :  { %648 = vmatprep.subr.bf16.mxu1 %v647_v38  ;;  %v667_v63 = vpack.c.bf16 %v261_v60, %v260_v59  ;;  %v671_v4 = vpack.c.bf16 %v263_v3, %v262_v2  ;;  %p749_p2 = scmp.lt.s32.totalorder %s743_s18, %s743_s18 }
   0xc   :  { %592 = vmatmul.mubr.msk.f32.vlgmr.msra.gmra.mrb[0].mxu0 %vm35_vm0, %v21_v7 }
   0xd   :  { %594 = vmatprep.mubr.msk.f32.mxu0 %vm35_vm0, %v22_v8  ;;  %p750_p3 = por %p749_p2, %p748_p1 }
   0xe   :  { %650 = vmatpush3.bf16.msra.mxu1 %v647_v38 }
   0xf   :  { %652 = vmatprep.subr.bf16.mxu1 %v651_v41  ;;  %p751_p4 = pnand %p750_p3, %p744_p0 }
  0x10   :  { %595 = vmatmul.mubr.msk.f32.gmra.mrb[2].mxu0 %vm35_vm0, %v23_v9 }
  0x12   :  { %654 = vmatpush3.bf16.msra.mxu1 %v651_v41 }
  0x13   :  { %656 = vmatprep.subr.bf16.mxu1 %v655_v44 }
  0x16   :  { %658 = vmatpush3.bf16.msra.mxu1 %v655_v44 }
  0x17   :  { %660 = vmatprep.subr.bf16.mxu1 %v659_v47 }
  0x1a   :  { %662 = vmatpush3.bf16.msra.mxu1 %v659_v47 }
  0x1b   :  { %664 = vmatprep.subr.bf16.mxu1 %v663_v50 }
  0x1e   :  { %666 = vmatpush3.bf16.msra.mxu1 %v663_v50 }
  0x1f   :  { %668 = vmatprep.subr.bf16.mxu1 %v667_v63 }
  0x22   :  { %670 = vmatpush3.bf16.msra.mxu1 %v667_v63 }
  0x23   :  { %672 = vmatprep.subr.bf16.mxu1 %v671_v4 }
  0x26   :  { %674 = vmatpush3.bf16.msra.mxu1 %v671_v4 }
  0xdf   :  { %v593_v11 = vpop.f32.mrb[0].mxu0 }
  0xe0   :  { %v834_v12 = vadd.f32 %v593_v11, %v542_v10  ;;  %v114_v13 = vpop.f32.mrb[1].mxu0 }
  0xe1   :  { %v836_v14 = vadd.f32 %v542_v10, %v114_v13 }
  0xe2   :  { %v552_v15 = vpack.c.bf16 %v834_v12, %v834_v12  ;;  %v157_v24 = vsel %vm35_vm0, %v834_v12, -inf  ;;  %v179_v30 = vmul.f32 %v834_v12, %v834_v12 }
  0xe3   :  { %v596_v16 = vpop.f32.mrb[2].mxu0  ;;  %v154_v17 = vsel %vm35_vm0, %v836_v14, -inf  ;;  %v551_v18 = vpack.c.bf16 %v836_v14, %v836_v14  ;;  %v178_v29 = vmul.f32 %v836_v14, %v836_v14 }
  0xe4   :  { %v844_v19 = vadd.f32 %v596_v16, %v542_v10  ;;  %v124_v20 = vpop.f32.mrb[3].mxu0  ;;  %155 = vmax.xlane.f32.xlu0 %v154_v17  ;;  %151 = vst.msk [vmem:[#allocation2 + $0x4] sm:$0xf] %vm149_vm1, %v552_v15 }
  0xe5   :  { %v847_v21 = vadd.f32 %v542_v10, %v124_v20  ;;  %150 = vst.msk [vmem:[#allocation2] sm:$0xf] %vm149_vm1, %v551_v18  ;;  %v681_v32 = vpack.i.bf16 %v179_v30, %v178_v29 }
  0xe6   :  { %v554_v22 = vpack.c.bf16 %v844_v19, %v844_v19  ;;  %v163_v26 = vsel %vm35_vm0, %v844_v19, -inf  ;;  %v181_v28 = vmul.f32 %v844_v19, %v844_v19 }
  0xe7   :  { %v160_v23 = vsel %vm35_vm0, %v847_v21, -inf  ;;  %v553_v25 = vpack.c.bf16 %v847_v21, %v847_v21  ;;  %v180_v27 = vmul.f32 %v847_v21, %v847_v21 }
  0xe8   :  { %161 = vmax.xlane.f32.xlu1 %v160_v23  ;;  %158 = vmax.xlane.f32.xlu0 %v157_v24  ;;  %153 = vst.msk [vmem:[#allocation2 + $0xc] sm:$0xf] %vm149_vm1, %v554_v22 }
  0xe9   :  { %152 = vst.msk [vmem:[#allocation2 + $0x8] sm:$0xf] %vm149_vm1, %v553_v25  ;;  %v686_v31 = vpack.i.bf16 %v181_v28, %v180_v27 }
  0xec   :  { %164 = vmax.xlane.f32.xlu1 %v163_v26 }
  0xfd   :  { %687 = vrot.lane.b32.xlu1 %v686_v31, %s767_s0 }
  0xfe   :  { %682 = vrot.lane.b32.xlu0 %v681_v32, %s767_s0 }
 0x171   :  { %v906_v51 = vpop.xlane.xlu0 %155 }
 0x172   :  { %v166_v52 = vsub.f32 %v836_v14, %v906_v51 }
 0x174   :  { %v170_v55 = vmul.f32 1.442695, %v166_v52 }
 0x175   :  { %v910_v53 = vpop.xlane.xlu1 %161  ;;  %v912_v54 = vpop.xlane.xlu0 %158 }
 0x176   :  { %v168_v56 = vsub.f32 %v847_v21, %v910_v53  ;;  %v167_v57 = vsub.f32 %v834_v12, %v912_v54  ;;  %711 = vpow2.f32 %v170_v55 }
 0x178   :  { %v172_v58 = vmul.f32 1.442695, %v167_v57  ;;  %v174_v61 = vmul.f32 1.442695, %v168_v56 }
 0x179   :  { %v924_v62 = vpop.xlane.xlu1 %164  ;;  %v683_v22 = vpop.permute.xlu0 %682 }
 0x17a   :  { %v169_v0 = vsub.f32 %v844_v19, %v924_v62  ;;  %713 = vpow2.f32 %v172_v58  ;;  %v685_v23 = vunpack.i.h.bf16 %v683_v22  ;;  %v684_v24 = vunpack.i.l.bf16 %v683_v22 }
 0x17b   :  { %715 = vpow2.f32 %v174_v61 }
 0x17c   :  { %v176_v1 = vmul.f32 1.442695, %v169_v0  ;;  %v234_v30 = vsel %vm35_vm0, %v836_v14, %v684_v24  ;;  %v235_v31 = vsel %vm35_vm0, %v834_v12, %v685_v23 }
 0x17d   :  { %v688_v20 = vpop.permute.xlu1 %687 }
 0x17e   :  { %717 = vpow2.f32 %v176_v1  ;;  %v690_v32 = vunpack.i.h.bf16 %v688_v20  ;;  %v689_v33 = vunpack.i.l.bf16 %v688_v20 }
 0x180   :  { %v712_v5 = vpop.eup %711  ;;  %v237_v44 = vsel %vm35_vm0, %v844_v19, %v690_v32 }
 0x181   :  { %v182_v11 = vmul.f32 %v712_v5, %v836_v14 }
 0x184   :  { %v714_v6 = vpop.eup %713 }
 0x185   :  { %v691_v7 = vpack.i.bf16 %v714_v6, %v712_v5  ;;  %v183_v8 = vmul.f32 %v714_v6, %v834_v12  ;;  %v716_v9 = vpop.eup %715  ;;  %v236_v12 = vsel %vm35_vm0, %v847_v21, %v689_v33 }
 0x186   :  { %v184_v17 = vmul.f32 %v716_v9, %v847_v21 }
 0x187   :  { %692 = vrot.lane.b32.xlu1 %v691_v7, %s768_s13  ;;  %v696_v15 = vpack.i.bf16 %v183_v8, %v182_v11 }
 0x188   :  { %v718_v10 = vpop.eup %717 }
 0x189   :  { %v701_v13 = vpack.i.bf16 %v718_v10, %v716_v9  ;;  %v185_v16 = vmul.f32 %v718_v10, %v844_v19 }
 0x18b   :  { %702 = vrot.lane.b32.xlu0 %v701_v13, %s768_s13  ;;  %697 = vrot.lane.b32.xlu1 %v696_v15, %s769_s3  ;;  %v706_v18 = vpack.i.bf16 %v185_v16, %v184_v17 }
 0x18f   :  { %707 = vrot.lane.b32.xlu1 %v706_v18, %s769_s3 }
 0x1f9   :  { %v693_v25 = vpop.permute.xlu1 %692 }
 0x1fa   :  { %v695_v26 = vunpack.i.h.bf16 %v693_v25  ;;  %v694_v27 = vunpack.i.l.bf16 %v693_v25 }
 0x1fc   :  { %v239_v38 = vsel %vm238_vm2, %v234_v30, %v694_v27  ;;  %v240_v39 = vsel %vm238_vm2, %v235_v31, %v695_v26 }
 0x1fd   :  { %v703_v28 = vpop.permute.xlu0 %702  ;;  %v698_v29 = vpop.permute.xlu1 %697 }
 0x1fe   :  { %v700_v34 = vunpack.i.h.bf16 %v698_v29  ;;  %v699_v35 = vunpack.i.l.bf16 %v698_v29  ;;  %v705_v36 = vunpack.i.h.bf16 %v703_v28  ;;  %v704_v37 = vunpack.i.l.bf16 %v703_v28 }
 0x200   :  { %v244_v40 = vsel %vm243_vm3, %v239_v38, %v699_v35  ;;  %v245_v41 = vsel %vm243_vm3, %v240_v39, %v700_v34  ;;  %v241_v45 = vsel %vm238_vm2, %v236_v12, %v704_v37  ;;  %v242_v46 = vsel %vm238_vm2, %v237_v44, %v705_v36 }
 0x201   :  { %v708_v42 = vpop.permute.xlu1 %707  ;;  %629 = vmatprep.mubr.f32.mxu1 %v244_v40 }
 0x202   :  { %v710_v14 = vunpack.i.h.bf16 %v708_v42  ;;  %v709_v43 = vunpack.i.l.bf16 %v708_v42  ;;  %630 = vmatmul.mubr.f32.vlgmr.msra.gmra.mrb[0].mxu1 %v245_v41 }
 0x204   :  { %v246_v47 = vsel %vm243_vm3, %v241_v45, %v709_v43  ;;  %v247_v48 = vsel %vm243_vm3, %v242_v46, %v710_v14 }
 0x205   :  { %632 = vmatprep.mubr.f32.mxu1 %v246_v47 }
 0x206   :  { %633 = vmatmul.mubr.f32.gmra.mrb[2].mxu1 %v247_v48 }
 0x2d5   :  { %v956_v49 = vpop.f32.mrb[0].mxu1 }
 0x2d6   :  { %367 = vrot.lane.b32.xlu1 %v956_v49, %s770_s14  ;;  %v960_v21 = vpop.f32.mrb[1].mxu1  ;;  %v434_v2 = vmul.f32 %v956_v49, %v956_v49  ;;  %vm414_vm4 = vcmp.eq.f32.partialorder %v956_v49, inf  ;;  %v417_v46 = vand.u32 2147483648, %v956_v49  ;;  %vm416_vm6 = vcmp.eq.f32.partialorder %v956_v49, 0.0 }
 0x2d7   :  { %365 = vrot.lane.b32.xlu0 %v960_v21, %s770_s14  ;;  %v433_v4 = vmul.f32 %v960_v21, %v960_v21  ;;  %vm407_vm5 = vcmp.eq.f32.partialorder %v960_v21, inf  ;;  %vm409_vm7 = vcmp.eq.f32.partialorder %v960_v21, 0.0 }
 0x2d8   :  { %v438_v5 = vmul.f32 0.125, %v434_v2 }
 0x2d9   :  { %v964_v19 = vpop.f32.mrb[2].mxu1  ;;  %v437_v7 = vmul.f32 0.125, %v433_v4 }
 0x2da   :  { %371 = vrot.lane.b32.xlu1 %v964_v19, %s770_s14  ;;  %v968_v50 = vpop.f32.mrb[3].mxu1  ;;  %v436_v6 = vmul.f32 %v964_v19, %v964_v19  ;;  %vm428_vm8 = vcmp.eq.f32.partialorder %v964_v19, inf  ;;  %vm430_vm10 = vcmp.eq.f32.partialorder %v964_v19, 0.0 }
 0x2db   :  { %369 = vrot.lane.b32.xlu0 %v968_v50, %s770_s14  ;;  %v435_v8 = vmul.f32 %v968_v50, %v968_v50  ;;  %vm421_vm9 = vcmp.eq.f32.partialorder %v968_v50, inf }
 0x2dc   :  { %v440_v9 = vmul.f32 0.125, %v436_v6 }
 0x2dd   :  { %v439_v10 = vmul.f32 0.125, %v435_v8 }
 0x348   :  { %v368_v52 = vpop.permute.xlu1 %367 }
 0x349   :  { %719 = vrcp.f32 %v368_v52  ;;  %v366_v55 = vpop.permute.xlu0 %365 }
 0x34a   :  { %721 = vrcp.f32 %v366_v55  ;;  %v410_v55 = vand.u32 2147483648, %v960_v21 }
 0x34c   :  { %v372_v56 = vpop.permute.xlu1 %371 }
 0x34d   :  { %723 = vrcp.f32 %v372_v56  ;;  %v370_v57 = vpop.permute.xlu0 %369 }
 0x34e   :  { %725 = vrcp.f32 %v370_v57 }
 0x34f   :  { %727 = vlog2.f32 %v956_v49 }
 0x350   :  { %729 = vlog2.f32 %v960_v21 }
 0x351   :  { %731 = vlog2.f32 %v964_v19 }
 0x352   :  { %733 = vlog2.f32 %v968_v50 }
 0x353   :  { %v720_v58 = vpop.eup %719  ;;  %735 = vrsqrt.f32 %v956_v49 }
 0x354   :  { %v722_v59 = vpop.eup %721  ;;  %v380_v60 = vmul.f32 %v720_v58, %v956_v49  ;;  %737 = vrsqrt.f32 %v960_v21 }
 0x355   :  { %v378_v61 = vmul.f32 %v722_v59, %v960_v21  ;;  %739 = vrsqrt.f32 %v964_v19 }
 0x356   :  { %391 = vrot.lane.b32.xlu1 %v380_v60, %s771_s15  ;;  %741 = vrsqrt.f32 %v968_v50 }
 0x357   :  { %v724_v63 = vpop.eup %723  ;;  %389 = vrot.lane.b32.xlu0 %v378_v61, %s771_s15 }
 0x358   :  { %v726_v0 = vpop.eup %725  ;;  %v384_v1 = vmul.f32 %v724_v63, %v964_v19  ;;  %v431_v63 = vand.u32 2147483648, %v964_v19 }
 0x359   :  { %v382_v3 = vmul.f32 %v726_v0, %v968_v50  ;;  %v728_v11 = vpop.eup %727 }
 0x35a   :  { %395 = vrot.lane.b32.xlu1 %v384_v1, %s771_s15  ;;  %v730_v13 = vpop.eup %729  ;;  %v352_v15 = vmul.f32 0.6931472, %v728_v11  ;;  %v424_v1 = vand.u32 2147483648, %v968_v50 }
 0x35b   :  { %393 = vrot.lane.b32.xlu0 %v382_v3, %s771_s15  ;;  %v732_v16 = vpop.eup %731  ;;  %v350_v17 = vmul.f32 0.6931472, %v730_v13 }
 0x35c   :  { %v734_v18 = vpop.eup %733  ;;  %v358_v20 = vadd.f32 %v352_v15, %v912_v54  ;;  %v356_v22 = vmul.f32 0.6931472, %v732_v16 }
 0x35d   :  { %v357_v24 = vadd.f32 %v350_v17, %v906_v51  ;;  %v354_v25 = vmul.f32 0.6931472, %v734_v18 }
 0x35e   :  { %447 = vrot.lane.b32.xlu1 %v438_v5, %s770_s14  ;;  %v360_v30 = vadd.f32 %v356_v22, %v924_v62 }
 0x35f   :  { %445 = vrot.lane.b32.xlu0 %v437_v7, %s770_s14  ;;  %v359_v33 = vadd.f32 %v354_v25, %v910_v53  ;;  %v736_v53 = vpop.eup %735 }
 0x360   :  { %v738_v62 = vpop.eup %737  ;;  %v413_v39 = vmul.f32 %v736_v53, %v956_v49 }
 0x361   :  { %v740_v40 = vpop.eup %739  ;;  %v406_v41 = vmul.f32 %v738_v62, %v960_v21 }
 0x362   :  { %451 = vrot.lane.b32.xlu1 %v440_v9, %s770_s14  ;;  %v742_v42 = vpop.eup %741  ;;  %v415_v43 = vsel %vm414_vm4, %v956_v49, %v413_v39  ;;  %v427_v12 = vmul.f32 %v740_v40, %v964_v19 }
 0x363   :  { %449 = vrot.lane.b32.xlu0 %v439_v10, %s770_s14  ;;  %v408_v47 = vsel %vm407_vm5, %v960_v21, %v406_v41  ;;  %v420_v48 = vmul.f32 %v742_v42, %v968_v50  ;;  %v418_v56 = vsel %vm416_vm6, %v417_v46, %v415_v43 }
 0x364   :  { %v411_v59 = vsel %vm409_vm7, %v410_v55, %v408_v47  ;;  %v429_v60 = vsel %vm428_vm8, %v964_v19, %v427_v12 }
 0x365   :  { %v422_v0 = vsel %vm421_vm9, %v968_v50, %v420_v48 }
 0x3c8   :  { %v392_v23 = vpop.permute.xlu1 %391 }
 0x3c9   :  { %v402_v26 = vsub.f32 %v358_v20, %v392_v23  ;;  %v390_v27 = vpop.permute.xlu0 %389 }
 0x3ca   :  { %v401_v28 = vsub.f32 %v357_v24, %v390_v27 }
 0x3cb   :  { %v470_v29 = vmul.f32 0.3, %v402_v26 }
 0x3cc   :  { %v469_v31 = vmul.f32 0.3, %v401_v28  ;;  %v396_v32 = vpop.permute.xlu1 %395 }
 0x3cd   :  { %v404_v34 = vsub.f32 %v360_v30, %v396_v32  ;;  %479 = vrot.lane.b32.xlu1 %v470_v29, %s771_s15  ;;  %v394_v35 = vpop.permute.xlu0 %393 }
 0x3ce   :  { %v403_v54 = vsub.f32 %v359_v33, %v394_v35  ;;  %477 = vrot.lane.b32.xlu0 %v469_v31, %s771_s15 }
 0x3cf   :  { %v472_v36 = vmul.f32 0.3, %v404_v34 }
 0x3d0   :  { %v471_v51 = vmul.f32 0.3, %v403_v54  ;;  %v448_v37 = vpop.permute.xlu1 %447 }
 0x3d1   :  { %483 = vrot.lane.b32.xlu1 %v472_v36, %s771_s15  ;;  %v446_v38 = vpop.permute.xlu0 %445  ;;  %v458_v14 = vsub.f32 %v956_v49, %v448_v37 }
 0x3d2   :  { %481 = vrot.lane.b32.xlu0 %v471_v51, %s771_s15  ;;  %v457_v44 = vsub.f32 %v960_v21, %v446_v38  ;;  %v466_v21 = vmul.f32 0.5, %v418_v56 }
 0x3d3   :  { %v462_v57 = vmul.f32 0.14285715, %v458_v14 }
 0x3d4   :  { %v452_v45 = vpop.permute.xlu1 %451  ;;  %v461_v61 = vmul.f32 0.14285715, %v457_v44 }
 0x3d5   :  { %v450_v52 = vpop.permute.xlu0 %449  ;;  %v460_v58 = vsub.f32 %v964_v19, %v452_v45 }
 0x3d6   :  { %v459_v49 = vsub.f32 %v968_v50, %v450_v52 }
 0x3d7   :  { %754 = shalt.err (!%p751_p4)
}
 0x3d8   :  { %s755_s21 = scalar_lea.hbm %s1069_s4, 256 }
 0x3d9   :  { %p756_p5 = scmp.ne.s32.totalorder %s1069_s4, %s755_s21  ;;  %p759_p6 = scmp.lt.u32.totalorder %s755_s21, %s1069_s4 }
 0x3db   :  { %p761_p7 = pnand %p759_p6, %p756_p5 }
 0x3dd   :  { %764 = shalt.err (!%p761_p7)
}
 0x3de   :  { %533 = dma.vmem_to_hbm [thread:$0]  %s528_s17, 256, %s1069_s4, [#allocation3], %s768_s13, %s768_s13, %s770_s14   ;;  %v465_v3 = vmul.f32 0.5, %v411_v59  ;;  %v432_v4 = vsel %vm430_vm10, %v431_v63, %v429_v60  ;;  %vm423_vm11 = vcmp.eq.f32.partialorder %v968_v50, 0.0  ;;  %v494_v5 = vmul.f32 0.2, %v462_v57 }
 0x3df   :  { %v464_v6 = vmul.f32 0.14285715, %v460_v58  ;;  %v425_v9 = vsel %vm423_vm11, %v424_v1, %v422_v0  ;;  %v493_v10 = vmul.f32 0.2, %v461_v61  ;;  %v463_v11 = vmul.f32 0.14285715, %v459_v49 }
 0x3e0   :  { %v468_v16 = vmul.f32 0.5, %v432_v4  ;;  %v467_v20 = vmul.f32 0.5, %v425_v9  ;;  %vm517_vm12 = vcmask 31744  }
 0x3e1   :  { %v496_v22 = vmul.f32 0.2, %v464_v6  ;;  %v495_v24 = vmul.f32 0.2, %v463_v11 }
 0x43f   :  { %v480_v2 = vpop.permute.xlu1 %479 }
 0x440   :  { %v490_v7 = vadd.f32 %v480_v2, %v466_v21  ;;  %v478_v8 = vpop.permute.xlu0 %477 }
 0x441   :  { %v489_v13 = vadd.f32 %v478_v8, %v465_v3 }
 0x442   :  { %v498_v15 = vadd.f32 %v494_v5, %v490_v7 }
 0x443   :  { %v497_v17 = vadd.f32 %v493_v10, %v489_v13  ;;  %v484_v18 = vpop.permute.xlu1 %483 }
 0x444   :  { %v492_v23 = vadd.f32 %v484_v18, %v468_v16  ;;  %507 = vrot.lane.b32.xlu1 %v498_v15, %s771_s15  ;;  %v482_v19 = vpop.permute.xlu0 %481 }
 0x445   :  { %v491_v50 = vadd.f32 %v482_v19, %v467_v20  ;;  %505 = vrot.lane.b32.xlu0 %v497_v17, %s771_s15 }
 0x446   :  { %v500_v25 = vadd.f32 %v496_v22, %v492_v23 }
 0x447   :  { %v499_v26 = vadd.f32 %v495_v24, %v491_v50 }
 0x448   :  { %511 = vrot.lane.b32.xlu1 %v500_v25, %s771_s15 }
 0x449   :  { %509 = vrot.lane.b32.xlu0 %v499_v26, %s771_s15 }
 0x4b6   :  { %v508_v27 = vpop.permute.xlu1 %507 }
 0x4b7   :  { %519 = vst.msk [vmem:[%s1070_s5 + $0x8] sm:$0xff] %vm517_vm12, %v508_v27  ;;  %v506_v28 = vpop.permute.xlu0 %505 }
 0x4b8   :  { %518 = vst.msk [vmem:[%s1070_s5] sm:$0xff] %vm517_vm12, %v506_v28 }
 0x4ba   :  { %v512_v29 = vpop.permute.xlu1 %511 }
 0x4bb   :  { %521 = vst.msk [vmem:[%s1070_s5 + $0x18] sm:$0xff] %vm517_vm12, %v512_v29  ;;  %v510_v30 = vpop.permute.xlu0 %509 }
 0x4bc   :  { %520 = vst.msk [vmem:[%s1070_s5 + $0x10] sm:$0xff] %vm517_vm12, %v510_v30 }
 0x4bd   :  { %765 = dma.done.wait [#allocation3], 256  }
 0x4be   :  { %766 = vsyncadd [#allocation3], 4294967040 }
 0x4bf   :  { %541 = vsyncpa [#allocation3], 1 }

</bundles_post_ra>
